<compile_context>
chip_gen: v7x
topology: tpu7x:2x2x1
jax: 0.10.0
libtpu: 0.0.40
codegen_flags: <defaults>
</compile_context>

<pallas_src>
import functools

import jax
import jax.numpy as jnp
from jax.experimental import pallas as pl
from jax.experimental.pallas import tpu as pltpu

_LANE = 128
# 2048 rows x 128 lanes x 4 B = 1 MiB per f32 input block.  With default
# double buffering (2 inputs x 2 buffers) plus <=2 accumulators this is ~6 MiB,
# comfortably inside the default scoped VMEM on v5e (16 MiB) / v6e / v7x.
_MAX_BLOCK_ROWS = 2048


# ----------------------------------------------------------------------------
# Pallas kernel: fused streaming reduction of sum((p-t)^2) and/or sum(|p-t|)
# ----------------------------------------------------------------------------
def _diff_reduce_kernel(pred_ref, tgt_ref, out_ref, *acc_refs,
                        modes, rows, block_rows, needs_mask):
    i = pl.program_id(0)

    @pl.when(i == 0)
    def _init():
        for acc in acc_refs:
            acc[...] = jnp.zeros_like(acc)

    d = pred_ref[...].astype(jnp.float32) - tgt_ref[...].astype(jnp.float32)
    if needs_mask:
        # Last grid block may extend past the real row count (Pallas pads the
        # edge block with unspecified values) -> zero out the padded rows.
        row_ids = jax.lax.broadcasted_iota(jnp.int32, d.shape, 0) + i * block_rows
        d = jnp.where(row_ids < rows, d, 0.0)

    # Hot loop: pure VPU elementwise accumulate into VMEM (no XLU / SMEM RMW).
    for mode, acc in zip(modes, acc_refs):
        if mode == "mse":
            acc[...] += d * d
        else:  # "l1"
            acc[...] += jnp.abs(d)

    @pl.when(i == pl.num_programs(0) - 1)
    def _finalize():
        for k, acc in enumerate(acc_refs):
            out_ref[0, k] = jnp.sum(acc[...])


def _pallas_diff_means(pred, tgt, modes):
    """Mean of (pred-tgt)^2 ("mse") and/or |pred-tgt| ("l1") in one HBM pass.

    Returns a dict mode -> f32 scalar.
    """
    assert pred.shape == tgt.shape, (pred.shape, tgt.shape)
    modes = tuple(modes)
    n = pred.size

    # Flatten in native dtype (up-cast happens inside the kernel).  Only pad
    # when n is not lane aligned (pad < 128 elems; zeros are neutral for both
    # sum-of-squares and sum-of-abs).
    pf = pred.reshape(-1)
    tf = tgt.reshape(-1)
    if n % _LANE != 0:
        pad = _LANE - n % _LANE
        pf = jnp.pad(pf, (0, pad))
        tf = jnp.pad(tf, (0, pad))
    rows = pf.shape[0] // _LANE
    pf = pf.reshape(rows, _LANE)
    tf = tf.reshape(rows, _LANE)

    # Block: either the whole array (small inputs) or 2048-row slabs.
    block_rows = rows if rows <= _MAX_BLOCK_ROWS else _MAX_BLOCK_ROWS
    grid_n = pl.cdiv(rows, block_rows)
    needs_mask = (rows % block_rows) != 0

    kernel = functools.partial(
        _diff_reduce_kernel, modes=modes, rows=rows,
        block_rows=block_rows, needs_mask=needs_mask)

    sums = pl.pallas_call(
        kernel,
        out_shape=jax.ShapeDtypeStruct((1, len(modes)), jnp.float32),
        grid_spec=pltpu.PrefetchScalarGridSpec(
            num_scalar_prefetch=0,
            grid=(grid_n,),
            in_specs=[
                pl.BlockSpec((block_rows, _LANE), lambda i: (i, 0)),
                pl.BlockSpec((block_rows, _LANE), lambda i: (i, 0)),
            ],
            out_specs=pl.BlockSpec(memory_space=pltpu.SMEM),
            scratch_shapes=[pltpu.VMEM((block_rows, _LANE), jnp.float32)
                            for _ in modes],
        ),
        compiler_params=pltpu.CompilerParams(
            dimension_semantics=("arbitrary",)),  # reduction axis
        cost_estimate=pl.CostEstimate(
            flops=3 * n * len(modes),
            transcendentals=0,
            bytes_accessed=n * (pf.dtype.itemsize + tf.dtype.itemsize)),
    )(pf, tf)

    inv_n = 1.0 / float(n)
    return {m: sums[0, k] * inv_n for k, m in enumerate(modes)}


# ----------------------------------------------------------------------------
# Concrete loss terms (the reference module ships an empty loss_class_dict;
# populate it with the standard MSE / L1 image-reconstruction terms).
# ----------------------------------------------------------------------------
class _DiffLoss:
    mode = None  # "mse" or "l1"

    def __call__(self, input_data, model_output, data, module):
        return _pallas_diff_means(model_output, data["target"], (self.mode,))[self.mode]


class _MSELoss(_DiffLoss):
    mode = "mse"


class _L1Loss(_DiffLoss):
    mode = "l1"


loss_class_dict = {"MSE": _MSELoss, "L1": _L1Loss}


# ----------------------------------------------------------------------------
# Loss container: same parsing / forward semantics as the PyTorch module
# ----------------------------------------------------------------------------
class Loss:
    def __init__(self, loss_string):
        loss_string = loss_string.replace(" ", "")
        self.loss_list = []
        for single_loss in loss_string.split("+"):
            weight, name = single_loss.split("*")
            ratio = True if "r" in weight else False
            weight = float(weight.replace("r", ""))
            if name in loss_class_dict:
                self.loss_list.append({
                    "name": name,
                    "weight": float(weight),
                    "func": loss_class_dict[name](),
                    "ratio": ratio,
                })
            else:
                raise RuntimeError("undefined loss term: {}".format(name))

    def forward(self, input_data, model_output, data, module,
                loss_name=None, change_name=None, ratio=1.0):
        loss_arg = (input_data, model_output, data, module)
        if loss_name is not None:
            for single_loss in self.loss_list:
                if loss_name == single_loss["name"]:
                    loss = single_loss["weight"] * single_loss["func"](*loss_arg)
                    if single_loss["ratio"]:
                        loss = loss * ratio
                    if change_name is not None:
                        return {change_name: loss}
                    return {single_loss["name"]: loss}
            raise RuntimeError(
                "there is no such loss in training losses: {}".format(loss_name))

        losses = {}
        # Fused path: all diff-reduction terms (MSE/L1) share the same operand
        # pair, so compute them in ONE kernel pass over pred/target.
        fusible = [sl for sl in self.loss_list if isinstance(sl["func"], _DiffLoss)]
        others = [sl for sl in self.loss_list if not isinstance(sl["func"], _DiffLoss)]
        if fusible:
            modes = tuple(dict.fromkeys(sl["func"].mode for sl in fusible))
            means = _pallas_diff_means(model_output, data["target"], modes)
            for sl in fusible:
                val = sl["weight"] * means[sl["func"].mode]
                if sl["ratio"]:
                    val = val * ratio
                losses[sl["name"]] = val
        for sl in others:
            val = sl["weight"] * sl["func"](*loss_arg)
            if sl["ratio"]:
                val = val * ratio
            losses[sl["name"]] = val
        return losses

    __call__ = forward


if __name__ == "__main__":
    key = jax.random.PRNGKey(0)
    k1, k2 = jax.random.split(key)

    # Small shapes consistent with an NCHW image network: batch=2, C=4, 16x16
    x = jax.random.normal(k1, (2, 4, 16, 16), dtype=jnp.float32)       # input_data
    target = jax.random.normal(k2, (2, 4, 16, 16), dtype=jnp.float32)  # ground truth
    model_output = 0.9 * x + 0.1                                       # glue (plain JAX)
    data = {"input": x, "target": target}
    module = {}

    loss_fn = Loss("1*MSE + 0.5r*L1")
    losses = jax.block_until_ready(loss_fn(x, model_output, data, module, ratio=0.5))

    # Correctness check vs plain-JAX reference (fused single-pass kernel)
    ref_mse = 1.0 * jnp.mean((model_output - target) ** 2)
    ref_l1 = 0.5 * jnp.mean(jnp.abs(model_output - target)) * 0.5
    assert jnp.allclose(losses["MSE"], ref_mse, rtol=1e-5, atol=1e-5)
    assert jnp.allclose(losses["L1"], ref_l1, rtol=1e-5, atol=1e-5)

    # loss_name / change_name path (single-mode kernel)
    single = jax.block_until_ready(
        loss_fn(x, model_output, data, module, loss_name="MSE", change_name="mse_renamed"))
    assert "mse_renamed" in single
    assert jnp.allclose(single["mse_renamed"], ref_mse, rtol=1e-5, atol=1e-5)

    # Exercise the multi-block grid + last-block-mask path (3200 rows -> 2 blocks).
    k3, k4 = jax.random.split(k2)
    a = jax.random.normal(k3, (2, 8, 160, 160), dtype=jnp.float32)
    b = jax.random.normal(k4, (2, 8, 160, 160), dtype=jnp.float32)
    got = jax.block_until_ready(_pallas_diff_means(a, b, ("mse", "l1")))
    assert jnp.allclose(got["mse"], jnp.mean((a - b) ** 2), rtol=1e-5, atol=1e-5)
    assert jnp.allclose(got["l1"], jnp.mean(jnp.abs(a - b)), rtol=1e-5, atol=1e-5)

    # Exercise the non-lane-aligned pad path with native bf16 inputs (no host upcast).
    c = jax.random.normal(k3, (2, 3, 11, 31), dtype=jnp.bfloat16)   # 2046 elems -> pad 2
    d = jax.random.normal(k4, (2, 3, 11, 31), dtype=jnp.bfloat16)
    got2 = jax.block_until_ready(_pallas_diff_means(c, d, ("l1",)))
    ref2 = jnp.mean(jnp.abs(c.astype(jnp.float32) - d.astype(jnp.float32)))
    assert jnp.allclose(got2["l1"], ref2, rtol=1e-4, atol=1e-4)

    print("KERNEL_OK")
</pallas_src>

<mosaic_0001>
module attributes {stable_mosaic.version = 11 : i64} {
  func.func @_diff_reduce_kernel(%arg0: i32, %arg1: memref<16x128xf32, #tpu.memory_space<vmem>>, %arg2: memref<16x128xf32, #tpu.memory_space<vmem>>, %arg3: memref<1x2xf32, #tpu.memory_space<smem>>, %arg4: memref<16x128xf32, #tpu.memory_space<vmem>>, %arg5: memref<16x128xf32, #tpu.memory_space<vmem>>) attributes {dimension_semantics = [#tpu.dimension_semantics<arbitrary>], iteration_bounds = array<i64: 1>, scalar_prefetch = 0 : i64, scratch_operands = 2 : i64, tpu.core_type = #tpu.core_type<tc>, window_params = [{transform_indices = @transform_0, window_bounds = array<i64: 16, 128>}, {transform_indices = @transform_1, window_bounds = array<i64: 16, 128>}, {transform_indices = @transform_2, window_bounds = array<i64: 1, 2>}]} {
    %c0_i32 = arith.constant 0 : i32
    %0 = arith.cmpi eq, %arg0, %c0_i32 : i32
    %1 = arith.extui %0 : i1 to i32
    %c0_i32_0 = arith.constant 0 : i32
    %2 = arith.cmpi ne, %1, %c0_i32_0 : i32
    scf.if %2 {
      %cst = arith.constant 0.000000e+00 : f32
      %17 = vector.broadcast %cst : f32 to vector<16x128xf32>
      %c0_14 = arith.constant 0 : index
      %c0_15 = arith.constant 0 : index
      %18 = vector.load %arg4[%c0_14, %c0_15] : memref<16x128xf32, #tpu.memory_space<vmem>>, vector<16x128xf32>
      tpu.vector_store %arg4[%c0_14, %c0_15], %17 {strides = array<i32>} : memref<16x128xf32, #tpu.memory_space<vmem>>, vector<16x128xf32>,
      %cst_16 = arith.constant 0.000000e+00 : f32
      %19 = vector.broadcast %cst_16 : f32 to vector<16x128xf32>
      %c0_17 = arith.constant 0 : index
      %c0_18 = arith.constant 0 : index
      %20 = vector.load %arg5[%c0_17, %c0_18] : memref<16x128xf32, #tpu.memory_space<vmem>>, vector<16x128xf32>
      tpu.vector_store %arg5[%c0_17, %c0_18], %19 {strides = array<i32>} : memref<16x128xf32, #tpu.memory_space<vmem>>, vector<16x128xf32>,
    } else {
    }
    %c0 = arith.constant 0 : index
    %c0_1 = arith.constant 0 : index
    %3 = vector.load %arg1[%c0, %c0_1] : memref<16x128xf32, #tpu.memory_space<vmem>>, vector<16x128xf32>
    %c0_2 = arith.constant 0 : index
    %c0_3 = arith.constant 0 : index
    %4 = vector.load %arg2[%c0_2, %c0_3] : memref<16x128xf32, #tpu.memory_space<vmem>>, vector<16x128xf32>
    %5 = arith.subf %3, %4 : vector<16x128xf32>
    %c0_4 = arith.constant 0 : index
    %c0_5 = arith.constant 0 : index
    %6 = vector.load %arg4[%c0_4, %c0_5] : memref<16x128xf32, #tpu.memory_space<vmem>>, vector<16x128xf32>
    %7 = arith.mulf %5, %5 : vector<16x128xf32>
    %8 = arith.addf %6, %7 : vector<16x128xf32>
    %c0_6 = arith.constant 0 : index
    %c0_7 = arith.constant 0 : index
    %9 = vector.load %arg4[%c0_6, %c0_7] : memref<16x128xf32, #tpu.memory_space<vmem>>, vector<16x128xf32>
    tpu.vector_store %arg4[%c0_6, %c0_7], %8 {strides = array<i32>} : memref<16x128xf32, #tpu.memory_space<vmem>>, vector<16x128xf32>,
    %c0_8 = arith.constant 0 : index
    %c0_9 = arith.constant 0 : index
    %10 = vector.load %arg5[%c0_8, %c0_9] : memref<16x128xf32, #tpu.memory_space<vmem>>, vector<16x128xf32>
    %11 = math.absf %5 : vector<16x128xf32>
    %12 = arith.addf %10, %11 : vector<16x128xf32>
    %c0_10 = arith.constant 0 : index
    %c0_11 = arith.constant 0 : index
    %13 = vector.load %arg5[%c0_10, %c0_11] : memref<16x128xf32, #tpu.memory_space<vmem>>, vector<16x128xf32>
    tpu.vector_store %arg5[%c0_10, %c0_11], %12 {strides = array<i32>} : memref<16x128xf32, #tpu.memory_space<vmem>>, vector<16x128xf32>,
    %c0_i32_12 = arith.constant 0 : i32
    %14 = arith.cmpi eq, %arg0, %c0_i32_12 : i32
    %15 = arith.extui %14 : i1 to i32
    %c0_i32_13 = arith.constant 0 : i32
    %16 = arith.cmpi ne, %15, %c0_i32_13 : i32
    scf.if %16 {
      %c0_14 = arith.constant 0 : index
      %c0_15 = arith.constant 0 : index
      %17 = vector.load %arg4[%c0_14, %c0_15] : memref<16x128xf32, #tpu.memory_space<vmem>>, vector<16x128xf32>
      %18 = vector.shape_cast %17 : vector<16x128xf32> to vector<1x16x128xf32>
      %cst = arith.constant dense<0.000000e+00> : vector<1xf32>
      %19 = vector.multi_reduction <add>, %18, %cst [1, 2] : vector<1x16x128xf32> to vector<1xf32>
      %20 = vector.shape_cast %19 : vector<1xf32> to vector<1x1x1xf32>
      %21 = vector.extract %20[0, 0, 0] : f32 from vector<1x1x1xf32>
      %c0_16 = arith.constant 0 : index
      %c0_17 = arith.constant 0 : index
      %22 = memref.load %arg3[%c0_16, %c0_17] : memref<1x2xf32, #tpu.memory_space<smem>>
      memref.store %21, %arg3[%c0_16, %c0_17] : memref<1x2xf32, #tpu.memory_space<smem>>
      %c0_18 = arith.constant 0 : index
      %c0_19 = arith.constant 0 : index
      %23 = vector.load %arg5[%c0_18, %c0_19] : memref<16x128xf32, #tpu.memory_space<vmem>>, vector<16x128xf32>
      %24 = vector.shape_cast %23 : vector<16x128xf32> to vector<1x16x128xf32>
      %cst_20 = arith.constant dense<0.000000e+00> : vector<1xf32>
      %25 = vector.multi_reduction <add>, %24, %cst_20 [1, 2] : vector<1x16x128xf32> to vector<1xf32>
      %26 = vector.shape_cast %25 : vector<1xf32> to vector<1x1x1xf32>
      %27 = vector.extract %26[0, 0, 0] : f32 from vector<1x1x1xf32>
      %c0_21 = arith.constant 0 : index
      %c1 = arith.constant 1 : index
      %28 = memref.load %arg3[%c0_21, %c1] : memref<1x2xf32, #tpu.memory_space<smem>>
      memref.store %27, %arg3[%c0_21, %c1] : memref<1x2xf32, #tpu.memory_space<smem>>
    } else {
    }
    return
  }
  func.func @transform_0(%arg0: i32) -> (i32, i32) {
    %c0_i32 = arith.constant 0 : i32
    %c0_i32_0 = arith.constant 0 : i32
    return %arg0, %c0_i32 : i32, i32
  }
  func.func @transform_1(%arg0: i32) -> (i32, i32) {
    %c0_i32 = arith.constant 0 : i32
    %c0_i32_0 = arith.constant 0 : i32
    return %arg0, %c0_i32 : i32, i32
  }
  func.func @transform_2(%arg0: i32) -> (i32, i32) {
    %c0_i32 = arith.constant 0 : i32
    %c0_i32_0 = arith.constant 0 : i32
    %c0_i32_1 = arith.constant 0 : i32
    return %c0_i32, %c0_i32_0 : i32, i32
  }
}

</mosaic_0001>

<bundles_post_ra>
// kernel: tpu_custom_call.1
= control target key start
LH: loop header
LB: loop body
LE: loop exit
PB: predicated region body
PF: predicated region fallthrough
CT: control target
= control target key end

     0   :  { %7 = vsyncpa [#allocation5], 0  ;;  %s241_s0 = inlined_call_operand.hbm [shape: f32[16,128], index: 0, kind: input, shape index: {}]   ;;  %s242_s1 = inlined_call_operand.hbm [shape: f32[16,128], index: 1, kind: input, shape index: {}]   ;;  %s243_s2 = inlined_call_operand.hbm [shape: f32[1,2], index: 2, kind: output, shape index: {}]  }
   0x1   :  { %8 = vsyncpa [#allocation8], 0 }
   0x2   :  { %9 = vsyncpa [#allocation6], 0  ;;  %s185_s9 = smov [#allocation4]   ;;  %s125_s13 = scalar_lea.hbm %s241_s0, 256 }
   0x3   :  { %s15_s10 = sshll.u32 %s185_s9, 4  ;;  %p126_p0 = scmp.ne.s32.totalorder %s241_s0, %s125_s13  ;;  %s16_s10 = int_to_ptr.vmem [resolvable:$true] %s15_s10 }
   0x4   :  { %p129_p1 = scmp.lt.u32.totalorder %s125_s13, %s241_s0 }
   0x6   :  { %p131_p2 = pnand %p129_p1, %p126_p0 }
   0x8   :  { %134 = shalt.err (!%p131_p2)
}
   0x9   :  { %s135_s18 = scalar_lea.vmem %s16_s10, 256  ;;  %p140_p4 = scmp.lt.s32.totalorder %s16_s10, %s16_s10 }
   0xa   :  { %p136_p3 = scmp.ne.s32.totalorder %s16_s10, %s135_s18  ;;  %p141_p5 = scmp.lt.s32.totalorder %s135_s18, %s135_s18 }
   0xc   :  { %p142_p6 = por %p141_p5, %p140_p4 }
   0xe   :  { %p143_p7 = pnand %p142_p6, %p136_p3 }
  0x10   :  { %146 = shalt.err (!%p143_p7)
}
  0x11   :  { %s186_s19 = smov 128   ;;  %s187_s20 = smov 8  }
  0x12   :  { %21 = dma.hbm_to_vmem [thread:$0]  %s241_s0, 256, %s16_s10, [#allocation5], %s186_s19, %s186_s19, %s187_s20  }
  0x13   :  { %s188_s23 = smov [#allocation7]   ;;  %s147_s27 = scalar_lea.hbm %s242_s1, 256 }
  0x14   :  { %s27_s24 = sshll.u32 %s188_s23, 4  ;;  %p148_p8 = scmp.ne.s32.totalorder %s242_s1, %s147_s27  ;;  %s28_s24 = int_to_ptr.vmem [resolvable:$true] %s27_s24 }
  0x15   :  { %p151_p9 = scmp.lt.u32.totalorder %s147_s27, %s242_s1 }
  0x17   :  { %p153_p10 = pnand %p151_p9, %p148_p8 }
  0x19   :  { %156 = shalt.err (!%p153_p10)
}
  0x1a   :  { %s157_s4 = scalar_lea.vmem %s28_s24, 256  ;;  %p162_p12 = scmp.lt.s32.totalorder %s28_s24, %s28_s24 }
  0x1b   :  { %p158_p11 = scmp.ne.s32.totalorder %s28_s24, %s157_s4  ;;  %p163_p13 = scmp.lt.s32.totalorder %s157_s4, %s157_s4 }
  0x1d   :  { %p164_p0 = por %p163_p13, %p162_p12 }
  0x1f   :  { %p165_p1 = pnand %p164_p0, %p158_p11 }
  0x21   :  { %168 = shalt.err (!%p165_p1)
}
  0x22   :  { %33 = dma.hbm_to_vmem [thread:$0]  %s242_s1, 256, %s28_s24, [#allocation8], %s186_s19, %s186_s19, %s187_s20  }
  0x23   :  { %179 = dma.done.wait [#allocation5], 256  }
  0x24   :  { %180 = vsyncadd [#allocation5], 4294967040 }
  0x25   :  { %181 = dma.done.wait [#allocation8], 256  }
  0x26   :  { %182 = vsyncadd [#allocation8], 4294967040  ;;  %v48_v0 = vld [vmem:[#allocation4] sm:$0xff]  ;;  %v49_v1 = vld [vmem:[#allocation4 + $0x8] sm:$0xff]  ;;  %s169_s9 = scalar_lea.hbm %s243_s2, 16 }
  0x27   :  { %v50_v2 = vld [vmem:[#allocation7] sm:$0xff]  ;;  %v51_v3 = vld [vmem:[#allocation7 + $0x8] sm:$0xff]  ;;  %p170_p2 = scmp.ne.s32.totalorder %s243_s2, %s169_s9  ;;  %p173_p3 = scmp.lt.u32.totalorder %s169_s9, %s243_s2 }
  0x28   :  { %v52_v4 = vsub.f32 %v48_v0, %v50_v2  ;;  %v53_v5 = vsub.f32 %v49_v1, %v51_v3 }
  0x29   :  { %p175_p4 = pnand %p173_p3, %p170_p2 }
  0x2a   :  { %v56_v6 = vmul.f32 %v52_v4, %v52_v4  ;;  %v57_v7 = vmul.f32 %v53_v5, %v53_v5  ;;  %v64_v8 = vand.u32 2147483647, %v52_v4  ;;  %v65_v9 = vand.u32 2147483647, %v53_v5 }
  0x2c   :  { %v75_v10 = vadd.f32 %v57_v7, %v56_v6  ;;  %v89_v11 = vadd.f32 %v65_v9, %v64_v8 }
  0x2e   :  { %76 = vadd.xlane.f32.xlu0 %v75_v10 }
  0x32   :  { %90 = vadd.xlane.f32.xlu0 %v89_v11 }
  0xbb   :  { %v77_v12 = vpop.xlane.xlu0 %76 }
  0xbc   :  { %v78_v13 = vrot.slane %v77_v12, 4 }
  0xbe   :  { %v79_v14 = vadd.f32 %v78_v13, %v77_v12 }
  0xbf   :  { %v91_v15 = vpop.xlane.xlu0 %90 }
  0xc0   :  { %v80_v16 = vrot.slane %v79_v14, 2  ;;  %v92_v17 = vrot.slane %v91_v15, 4 }
  0xc2   :  { %v93_v18 = vadd.f32 %v92_v17, %v91_v15  ;;  %v81_v19 = vadd.f32 %v80_v16, %v79_v14 }
  0xc4   :  { %v94_v20 = vrot.slane %v93_v18, 2  ;;  %v82_v21 = vrot.slane %v81_v19, 1 }
  0xc6   :  { %v95_v22 = vadd.f32 %v94_v20, %v93_v18  ;;  %v83_v23 = vadd.f32 %v82_v21, %v81_v19 }
  0xc8   :  { %116 = vpush %v83_v23  ;;  %v96_v24 = vrot.slane %v95_v22, 1 }
  0xca   :  { %v97_v25 = vadd.f32 %v96_v24, %v95_v22 }
  0xcc   :  { %118 = vpush %v97_v25 }
  0xf9   :  { %s117_s1 = spop %116 }
  0xfa   :  { %86 = sst [smem:[#allocation9]] %s117_s1 }
  0xfd   :  { %s119_s6 = spop %118 }
  0xfe   :  { %100 = sst [smem:[#allocation9 + $0x1]] %s119_s6 }
  0xff   :  { %178 = shalt.err (!%p175_p4)
}
 0x100   :  { %s189_s14 = smov [#allocation9]  }
 0x101   :  { %108 = dma.smem_to_hbm %s189_s14, 16, %s243_s2, [#allocation6]  }
 0x102   :  { %183 = dma.done.wait [#allocation6], 16  }
 0x103   :  { %184 = vsyncadd [#allocation6], 4294967280 }
 0x104   :  { %112 = sfence }
 0x105   :  { %113 = vsyncpa [#allocation5], 1 }
 0x106   :  { %114 = vsyncpa [#allocation8], 1 }
 0x107   :  { %115 = vsyncpa [#allocation6], 1 }

</bundles_post_ra>
